<compile_context>
chip_gen: v6e
topology: v6e:2x2x1
jax: 0.10.0
libtpu: 0.0.40
codegen_flags: <defaults>
</compile_context>

<pallas_src>
import jax
import jax.numpy as jnp
from jax.experimental import pallas as pl
from jax.experimental.pallas import tpu as pltpu


def se_kernel(x_ref, w1t_ref, b1_ref, w2t_ref, b2_ref, o_ref):
    # x_ref block: (BT, C, HW), native dtype (f32 or bf16).
    hw = x_ref.shape[-1]

    # Global average pool over H*W with f32 accumulation. The cast is fused
    # into the lane reduction; no f32 copy of the whole tile is kept alive.
    pooled = jnp.sum(x_ref[...], axis=-1, dtype=jnp.float32) * (1.0 / hw)   # (BT, C)

    # reduction 1x1 conv == row-form matmul on the MXU: (BT, C) @ (C, mid)
    s1 = jnp.dot(pooled, w1t_ref[...].astype(jnp.float32),
                 preferred_element_type=jnp.float32) + b1_ref[...].astype(jnp.float32)
    s1 = jnp.maximum(s1, 0.0)                                               # ReLU

    # expand 1x1 conv == (BT, mid) @ (mid, C)
    s2 = jnp.dot(s1, w2t_ref[...].astype(jnp.float32),
                 preferred_element_type=jnp.float32) + b2_ref[...].astype(jnp.float32)
    gate = jax.nn.sigmoid(s2)                                               # (BT, C) f32

    # Apply the per-(batch, channel) gate, broadcast over the spatial lanes.
    # Scale in the native dtype (avoids a second full-block f32 temp).
    gate3 = gate.astype(x_ref.dtype)[:, :, None]                            # (BT, C, 1)
    o_ref[...] = (x_ref[...] * gate3).astype(o_ref.dtype)


def _pick_bt(batch, per_batch_bytes, target_bytes):
    """Largest divisor of `batch` whose block is <= target_bytes; keep >=2 grid
    steps when possible so both v7x TensorCores get work."""
    bt = max(1, min(batch, target_bytes // max(per_batch_bytes, 1)))
    while bt > 1 and batch % bt != 0:
        bt -= 1
    if bt == batch and batch > 1:
        bt = max(1, batch // 2)
        while bt > 1 and batch % bt != 0:
            bt -= 1
    return bt


def se_module(x, w1, b1, w2, b2, *, target_block_bytes=1 << 20):
    """x: (B, C, H, W). w1: (mid, C), b1: (mid,), w2: (C, mid), b2: (C,).
    Returns (B, C, H, W) = x * sigmoid(expand(relu(reduce(avgpool(x)))))."""
    B, C, H, W = x.shape
    mid = w1.shape[0]
    HW = H * W
    itemsize = jnp.dtype(x.dtype).itemsize

    BT = _pick_bt(B, C * HW * itemsize, target_block_bytes)
    grid = (B // BT,)

    x_flat = x.reshape(B, C, HW)
    w1t = w1.T                      # (C, mid)
    w2t = w2.T                      # (mid, C)
    b1_row = b1.reshape(1, mid)
    b2_row = b2.reshape(1, C)

    # VMEM budget: in + out blocks, each double-buffered, plus weights + slack.
    block_bytes = BT * C * HW * itemsize
    weight_bytes = (C * mid * 2 + C + mid) * jnp.dtype(w1.dtype).itemsize
    vmem_needed = 4 * block_bytes + 2 * weight_bytes + (4 << 20)
    vmem_limit = int(min(max(vmem_needed, 32 << 20), 64 << 20))

    cost = pl.CostEstimate(
        flops=int(B * C * HW + 4 * B * C * mid),
        transcendentals=int(B * C),
        bytes_accessed=int(2 * B * C * HW * itemsize + weight_bytes),
    )

    out_flat = pl.pallas_call(
        se_kernel,
        out_shape=jax.ShapeDtypeStruct((B, C, HW), x.dtype),
        grid_spec=pltpu.PrefetchScalarGridSpec(
            num_scalar_prefetch=0,
            grid=grid,
            in_specs=[
                pl.BlockSpec((BT, C, HW), lambda b: (b, 0, 0)),
                pl.BlockSpec((C, mid), lambda b: (0, 0)),
                pl.BlockSpec((1, mid), lambda b: (0, 0)),
                pl.BlockSpec((mid, C), lambda b: (0, 0)),
                pl.BlockSpec((1, C), lambda b: (0, 0)),
            ],
            out_specs=pl.BlockSpec((BT, C, HW), lambda b: (b, 0, 0)),
        ),
        compiler_params=pltpu.CompilerParams(
            dimension_semantics=("parallel",),
            vmem_limit_bytes=vmem_limit,
        ),
        cost_estimate=cost,
    )(x_flat, w1t, b1_row, w2t, b2_row)

    return out_flat.reshape(B, C, H, W)


def se_reference(x, w1, b1, w2, b2):
    pooled = x.mean(axis=(2, 3))                               # (B, C)
    s1 = jnp.maximum(pooled @ w1.T + b1, 0.0)                  # (B, mid)
    s2 = jax.nn.sigmoid(s1 @ w2.T + b2)                        # (B, C)
    return x * s2[:, :, None, None]


if __name__ == "__main__":
    B, C, H, W = 4, 8, 16, 16
    reduction = 4
    mid = C // reduction

    key = jax.random.PRNGKey(0)
    kx, k1, kb1, k2, kb2 = jax.random.split(key, 5)

    x = jax.random.normal(kx, (B, C, H, W), dtype=jnp.float32)
    # Conv2d(C, mid, 1) weight: (mid, C, 1, 1) -> (mid, C); bias: (mid,)
    w1 = jax.random.normal(k1, (mid, C), dtype=jnp.float32) * 0.5
    b1 = jax.random.normal(kb1, (mid,), dtype=jnp.float32) * 0.1
    # Conv2d(mid, C, 1) weight: (C, mid, 1, 1) -> (C, mid); bias: (C,)
    w2 = jax.random.normal(k2, (C, mid), dtype=jnp.float32) * 0.5
    b2 = jax.random.normal(kb2, (C,), dtype=jnp.float32) * 0.1

    out = se_module(x, w1, b1, w2, b2)
    jax.block_until_ready(out)

    ref = se_reference(x, w1, b1, w2, b2)
    assert jnp.allclose(out, ref, atol=1e-5, rtol=1e-5), "mismatch vs reference"

    print("KERNEL_OK")
</pallas_src>

<mosaic_0001>
module attributes {stable_mosaic.version = 11 : i64} {
  func.func @se_kernel(%arg0: i32, %arg1: memref<2x8x256xf32, #tpu.memory_space<vmem>>, %arg2: memref<8x2xf32, #tpu.memory_space<vmem>>, %arg3: memref<1x2xf32, #tpu.memory_space<vmem>>, %arg4: memref<2x8xf32, #tpu.memory_space<vmem>>, %arg5: memref<1x8xf32, #tpu.memory_space<vmem>>, %arg6: memref<2x8x256xf32, #tpu.memory_space<vmem>>) attributes {dimension_semantics = [#tpu.dimension_semantics<parallel>], iteration_bounds = array<i64: 2>, scalar_prefetch = 0 : i64, scratch_operands = 0 : i64, tpu.core_type = #tpu.core_type<tc>, window_params = [{transform_indices = @transform_0, window_bounds = array<i64: 2, 8, 256>}, {pipeline_mode = #tpu.pipeline_mode<synchronous>, transform_indices = @transform_1, window_bounds = array<i64: 8, 2>}, {pipeline_mode = #tpu.pipeline_mode<synchronous>, transform_indices = @transform_2, window_bounds = array<i64: 1, 2>}, {pipeline_mode = #tpu.pipeline_mode<synchronous>, transform_indices = @transform_3, window_bounds = array<i64: 2, 8>}, {pipeline_mode = #tpu.pipeline_mode<synchronous>, transform_indices = @transform_4, window_bounds = array<i64: 1, 8>}, {transform_indices = @transform_5, window_bounds = array<i64: 2, 8, 256>}]} {
    %c0 = arith.constant 0 : index
    %c0_0 = arith.constant 0 : index
    %c0_1 = arith.constant 0 : index
    %0 = vector.load %arg1[%c0, %c0_0, %c0_1] : memref<2x8x256xf32, #tpu.memory_space<vmem>>, vector<2x8x256xf32>
    %cst = arith.constant dense<0.000000e+00> : vector<2x8xf32>
    %1 = vector.multi_reduction <add>, %0, %cst [2] : vector<2x8x256xf32> to vector<2x8xf32>
    %cst_2 = arith.constant 3.906250e-03 : f32
    %2 = vector.broadcast %cst_2 : f32 to vector<2x8xf32>
    %3 = arith.mulf %1, %2 : vector<2x8xf32>
    %c0_3 = arith.constant 0 : index
    %c0_4 = arith.constant 0 : index
    %4 = vector.load %arg2[%c0_3, %c0_4] : memref<8x2xf32, #tpu.memory_space<vmem>>, vector<8x2xf32>
    %cst_5 = arith.constant dense<0.000000e+00> : vector<2x2xf32>
    %5 = tpu.matmul %3, %4, %cst_5 {dimension_numbers = #tpu.dot_dimension_numbers<[1], [0], [0], [1], [0, 0, 1, 1], [], []>} : vector<2x8xf32>, vector<8x2xf32>, vector<2x2xf32> -> vector<2x2xf32>
    %c0_6 = arith.constant 0 : index
    %c0_7 = arith.constant 0 : index
    %6 = vector.load %arg3[%c0_6, %c0_7] : memref<1x2xf32, #tpu.memory_space<vmem>>, vector<1x2xf32>
    %7 = vector.broadcast %6 : vector<1x2xf32> to vector<2x2xf32>
    %8 = arith.addf %5, %7 : vector<2x2xf32>
    %cst_8 = arith.constant 0.000000e+00 : f32
    %9 = vector.broadcast %cst_8 : f32 to vector<2x2xf32>
    %10 = arith.maximumf %8, %9 : vector<2x2xf32>
    %c0_9 = arith.constant 0 : index
    %c0_10 = arith.constant 0 : index
    %11 = vector.load %arg4[%c0_9, %c0_10] : memref<2x8xf32, #tpu.memory_space<vmem>>, vector<2x8xf32>
    %cst_11 = arith.constant dense<0.000000e+00> : vector<2x8xf32>
    %12 = tpu.matmul %10, %11, %cst_11 {dimension_numbers = #tpu.dot_dimension_numbers<[1], [0], [0], [1], [0, 0, 1, 1], [], []>} : vector<2x2xf32>, vector<2x8xf32>, vector<2x8xf32> -> vector<2x8xf32>
    %c0_12 = arith.constant 0 : index
    %c0_13 = arith.constant 0 : index
    %13 = vector.load %arg5[%c0_12, %c0_13] : memref<1x8xf32, #tpu.memory_space<vmem>>, vector<1x8xf32>
    %14 = vector.broadcast %13 : vector<1x8xf32> to vector<2x8xf32>
    %15 = arith.addf %12, %14 : vector<2x8xf32>
    %16 = arith.negf %15 : vector<2x8xf32>
    %17 = math.exp %16 : vector<2x8xf32>
    %cst_14 = arith.constant 1.000000e+00 : f32
    %18 = vector.broadcast %cst_14 : f32 to vector<2x8xf32>
    %19 = arith.addf %18, %17 : vector<2x8xf32>
    %20 = arith.divf %18, %19 : vector<2x8xf32>
    %21 = vector.shape_cast %20 : vector<2x8xf32> to vector<2x8x1xf32>
    %c0_15 = arith.constant 0 : index
    %c0_16 = arith.constant 0 : index
    %c0_17 = arith.constant 0 : index
    %22 = vector.load %arg1[%c0_15, %c0_16, %c0_17] : memref<2x8x256xf32, #tpu.memory_space<vmem>>, vector<2x8x256xf32>
    %23 = vector.broadcast %21 : vector<2x8x1xf32> to vector<2x8x256xf32>
    %24 = arith.mulf %22, %23 : vector<2x8x256xf32>
    %c0_18 = arith.constant 0 : index
    %c0_19 = arith.constant 0 : index
    %c0_20 = arith.constant 0 : index
    %25 = vector.load %arg6[%c0_18, %c0_19, %c0_20] : memref<2x8x256xf32, #tpu.memory_space<vmem>>, vector<2x8x256xf32>
    tpu.vector_store %arg6[%c0_18, %c0_19, %c0_20], %24 {strides = array<i32>} : memref<2x8x256xf32, #tpu.memory_space<vmem>>, vector<2x8x256xf32>,
    return
  }
  func.func @transform_0(%arg0: i32) -> (i32, i32, i32) {
    %c0_i32 = arith.constant 0 : i32
    %c0_i32_0 = arith.constant 0 : i32
    %c0_i32_1 = arith.constant 0 : i32
    return %arg0, %c0_i32, %c0_i32_0 : i32, i32, i32
  }
  func.func @transform_1(%arg0: i32) -> (i32, i32) {
    %c0_i32 = arith.constant 0 : i32
    %c0_i32_0 = arith.constant 0 : i32
    %c0_i32_1 = arith.constant 0 : i32
    return %c0_i32, %c0_i32_0 : i32, i32
  }
  func.func @transform_2(%arg0: i32) -> (i32, i32) {
    %c0_i32 = arith.constant 0 : i32
    %c0_i32_0 = arith.constant 0 : i32
    %c0_i32_1 = arith.constant 0 : i32
    return %c0_i32, %c0_i32_0 : i32, i32
  }
  func.func @transform_3(%arg0: i32) -> (i32, i32) {
    %c0_i32 = arith.constant 0 : i32
    %c0_i32_0 = arith.constant 0 : i32
    %c0_i32_1 = arith.constant 0 : i32
    return %c0_i32, %c0_i32_0 : i32, i32
  }
  func.func @transform_4(%arg0: i32) -> (i32, i32) {
    %c0_i32 = arith.constant 0 : i32
    %c0_i32_0 = arith.constant 0 : i32
    %c0_i32_1 = arith.constant 0 : i32
    return %c0_i32, %c0_i32_0 : i32, i32
  }
  func.func @transform_5(%arg0: i32) -> (i32, i32, i32) {
    %c0_i32 = arith.constant 0 : i32
    %c0_i32_0 = arith.constant 0 : i32
    %c0_i32_1 = arith.constant 0 : i32
    return %arg0, %c0_i32, %c0_i32_0 : i32, i32, i32
  }
}

</mosaic_0001>

<bundles_post_ra>
// kernel: tpu_custom_call.1
= control target key start
LH: loop header
LB: loop body
LE: loop exit
PB: predicated region body
PF: predicated region fallthrough
CT: control target
= control target key end

     0   :  { %10 = vsyncpa [#allocation3], 0  ;;  %s962_s0 = inlined_call_operand.hbm [shape: f32[4,8,256], index: 0, kind: input, shape index: {}]   ;;  %s963_s1 = inlined_call_operand.vmem [shape: f32[8,2], index: 1, kind: input, shape index: {}]   ;;  %s964_s2 = inlined_call_operand.vmem [shape: f32[1,2], index: 2, kind: input, shape index: {}]   ;;  %s965_s3 = inlined_call_operand.vmem [shape: f32[2,8], index: 3, kind: input, shape index: {}]   ;;  %s966_s4 = inlined_call_operand.vmem [shape: f32[1,8], index: 4, kind: input, shape index: {}]   ;;  %s967_s5 = inlined_call_operand.hbm [shape: f32[4,8,256], index: 5, kind: output, shape index: {}]  }
   0x1   :  { %12 = vsyncpa [#allocation3 + $0x1], 0 }
   0x2   :  { %13 = vsyncpa [#allocation4], 0 }
   0x3   :  { %15 = vsyncpa [#allocation4 + $0x1], 0  ;;  %s784_s18 = smov 0   ;;  %s786_s19 = smov 0  }
   0x4   :  { %s788_s20 = smov 0   ;;  %s790_s21 = smov 0  }
   0x5 LB: > { %s805_s22 = sadd.s32 4294967295, %s744_s21   ;;  %s556_s23 = sadd.s32 4294967294, %s744_s21   ;;  %s744_s21 = sphi %s790_s21, %s982_s21   ;;  %s740_s20 = sphi %s788_s20, %s981_s20   ;;  %s736_s19 = sphi %s786_s19, %s980_s19   ;;  %s732_s18 = sphi %s784_s18, %s979_s18  }
   0x6   : > { %s809_s24 = sadd.s32 1, %s744_s21   ;;  %s28_s25 = sadd.s32 1, %s740_s20 }
   0x7   : > { %s25_s26 = ssub.s32 %s744_s21, %s809_s24  ;;  %p35_p0 = scmp.ne.s32.totalorder %s740_s20, %s736_s19 }
   0x8   : > { %p26_p1 = scmp.eq.s32.totalorder %s25_s26, 0  ;;  %p36_p2 = scmp.eq.s32.totalorder %s744_s21, 0 }
   0x9   : > { %p41_p3 = scmp.ne.s32.totalorder %s736_s19, %s732_s18  ;;  %p42_p4 = scmp.eq.s32.totalorder %s805_s22, 0 }
   0xa   : > { %s821_s27 = scalar_select %p26_p1, %s740_s20, %s28_s25  }
   0xb   : > { %p823_p5 = por %p36_p2, %p35_p0  ;;  %p827_p6 = por %p42_p4, %p41_p3 }
   0xc   : > { %p149_p7 = scmp.eq.s32.totalorder %s805_s22, 1  ;;  %p155_p8 = scmp.eq.s32.totalorder %s556_s23, 1 }
   0xd   : > { %s971_s29 = scalar_select %p827_p6, 1, 0 }
   0xe   : > { %p608_p10 = scmp.lt.s32.totalorder %s744_s21, 2  ;;  %p834_p11 = por %p149_p7, %p35_p0 }
   0xf   : > { %p838_p12 = por %p155_p8, %p41_p3  ;;  %s187_s7 = sand.u32 1, %s740_s20  }
  0x10   : > { %s972_s30 = scalar_select %p834_p11, 1, 0 }
  0x11   : > { %s973_s6 = scalar_select %p838_p12, 1, 0 }
  0x12   : > { %s579_s8 = sshll.u32 %s744_s21, 9  ;;  %s559_s9 = sshll.u32 %s187_s7, 5 }
  0x13   : > { %s847_s12 = scalar_lea.hbm %s962_s0, %s579_s8  ;;  %s191_s13 = scalar_lea.vmem [#allocation2], %s559_s9 }
  0x14   : > { %s199_s14 = sshll.u32 %s191_s13, 4  ;;  %p851_p13 = pnand %p608_p10, %p823_p5  ;;  %s855_s14 = int_to_ptr.vmem [resolvable:$true] %s199_s14 }
  0x15   : > { %s857_s16 = scalar_lea.sflag [#allocation3], %s187_s7  ;;  %s652_s17 = scalar_lea.hbm %s847_s12, 512 }
  0x16   : > { %p653_p0 = scmp.ne.s32.totalorder %s847_s12, %s652_s17  ;;  %p654_p1 = pneg %p851_p13 }
  0x17   : > { %s657_s26 = scalar_lea.hbm %s962_s0, 1024  ;;  %p658_p4 = scmp.lt.s32.totalorder %s847_s12, %s962_s0 }
  0x18   : > { %p655_p2 = pnand %p654_p1, %p653_p0  ;;  %p659_p5 = scmp.lt.s32.totalorder %s657_s26, %s652_s17 }
  0x1a   : > { %p656_p3 = pneg %p655_p2  ;;  %p660_p7 = por %p659_p5, %p658_p4 }
  0x1c   : > { %p661_p8 = pnand %p660_p7, %p656_p3 }
  0x1e   : > { %664 = shalt.err (!%p661_p8)
}
  0x1f   : > { %s665_s7 = scalar_lea.vmem %s855_s14, 512  ;;  %s746_s9 = smov [#allocation2]  }
  0x20   : > { %p666_p10 = scmp.ne.s32.totalorder %s855_s14, %s665_s7  ;;  %s670_s10 = sshll.u32 %s746_s9, 4  ;;  %s671_s10 = int_to_ptr.vmem [resolvable:$false] %s670_s10 }
  0x21   : > { %s672_s11 = scalar_lea.vmem %s671_s10, 1024  ;;  %p673_p2 = scmp.lt.s32.totalorder %s855_s14, %s671_s10 }
  0x22   : > { %p668_p9 = pnand %p666_p10, %p654_p1  ;;  %p674_p12 = scmp.lt.s32.totalorder %s672_s11, %s665_s7 }
  0x24   : > { %p669_p0 = pneg %p668_p9  ;;  %p675_p11 = por %p674_p12, %p673_p2 }
  0x26   : > { %p676_p6 = pnand %p675_p11, %p669_p0 }
  0x28   : > { %679 = shalt.err (!%p676_p6)
}
  0x29   : > { %s747_s13 = smov 256   ;;  %s748_s17 = smov 16  }
  0x2a   : > { %603 = dma.hbm_to_vmem [thread:$0]  (!%p851_p13), %s847_s12, 512, %s855_s14, %s857_s16, %s747_s13, %s747_s13, %s748_s17  }
  0x2b   : > { %p563_p9 = scmp.ge.s32.totalorder %s744_s21, 1  ;;  %p207_p1 = scmp.lt.s32.totalorder %s744_s21, 3 }
  0x2d   : > { %p208_p3 = pnand %p563_p9, %p207_p1 }
  0x2e   : > { %s881_s23 = sand.u32 (!%p208_p3), 1, %s736_s19   ;;  %p975_p6 = scmp.ne.s32.totalorder (!%p208_p3), %s971_s29, 0 }
  0x2f   : > { %211 = sbr.rel (%p208_p3) target bundleno = 764 (0x2fc), region = 40  ;;  %s564_s25 = sshll.u32 (!%p208_p3), %s881_s23, 5 }
  0x30   : > { %s214_s26 = scalar_lea.sflag (!%p208_p3), [#allocation3], %s881_s23  ;;  %s217_s28 = scalar_lea.vmem (!%p208_p3), [#allocation2], %s564_s25 }
  0x34   : > { %723 = dma.done.wait (%p975_p6), %s214_s26, 512  }
  0x35   : > { %725 = vsyncadd (%p975_p6), %s214_s26, 4294966784  ;;  %v246_v0 = vld [vmem:[%s217_s28] sm:$0xff]  ;;  %v247_v1 = vld [vmem:[%s217_s28 + $0x8] sm:$0xff]  ;;  %v749_v7 = vmov 0.0   ;;  %vm750_vm0 = vmmov 0   ;;  %v268_v8 = vlaneseq  ;;  %vm278_vm1 = vcmask 1041409  }
  0x36   : > { %v891_v2 = vld [vmem:[%s217_s28 + $0x10] sm:$0xff]  ;;  %v250_v3 = vadd.f32 %v247_v1, %v246_v0  ;;  %v893_v4 = vld [vmem:[%s217_s28 + $0x18] sm:$0xff]  ;;  %v258_v6 = vld [vmem:[%s963_s1] sm:$0xff]  ;;  %586 = vmatprep.subr.mxu0 %v749_v7  ;;  %588 = vmatprep.mubr.msk.f32.mxu0 %vm750_vm0, %v749_v7  ;;  %vm280_vm2 = vcmask 64512   ;;  %vm366_vm3 = vcmask 1041408   ;;  %vm362_vm4 = vcmask 15360  }
  0x37   : > { %v253_v5 = vadd.f32 %v893_v4, %v891_v2  ;;  %587 = vmatpush3.msra.mxu0 %v258_v6  ;;  %591 = vmatprep.subr.mxu1 %v749_v7  ;;  %v269_v9 = vand.u32 127, %v268_v8  ;;  %v271_v10 = vshrl.u32 %v268_v8, 7  ;;  %v354_v19 = vld [vmem:[%s965_s3] sm:$0x3]  ;;  %s243_s10 = scalar_lea.vmem [#allocation5], %s564_s25  ;;  %s581_s13 = sshll.u32 %s805_s22, 9 }
  0x38   : > { %251 = vadd.xlane.f32.xlu0 %v250_v3  ;;  %593 = vmatprep.mubr.msk.f32.mxu1 %vm750_vm0, %v749_v7  ;;  %v566_v20 = vld [vmem:[%s964_s2] ss:$0 sm:$0xff]  ;;  %s483_s11 = sshll.u32 %s243_s10, 4  ;;  %s917_s28 = scalar_lea.hbm %s967_s5, %s581_s13  ;;  %s912_s11 = int_to_ptr.vmem [resolvable:$true] %s483_s11 }
  0x39   : > { %v272_v12 = vsub.s32 %v269_v9, %v271_v10  ;;  %592 = vmatpush3.msk.msra.mxu1 %vm366_vm3, %v354_v19  ;;  %v568_v25 = vld [vmem:[%s966_s4] ss:$0 sm:$0xff]  ;;  %v448_v32 = vsub.s32 0, %v271_v10  ;;  %v455_v35 = vsub.s32 1, %v271_v10  ;;  %s469_s22 = scalar_lea.sflag [#allocation4], %s881_s23  ;;  %s680_s25 = scalar_lea.vmem %s912_s11, 512 }
  0x3a   : > { %p681_p11 = scmp.ne.s32.totalorder %s912_s11, %s680_s25  ;;  %p976_p12 = scmp.ne.s32.totalorder %s972_s30, 0 }
  0x3b   : > { %s751_s12 = smov [#allocation5]  }
  0x3c   : > { %254 = vadd.xlane.f32.xlu0 %v253_v5  ;;  %p682_p13 = pnand %p681_p11, %p976_p12  ;;  %s684_s14 = sshll.u32 %s751_s12, 4  ;;  %s685_s14 = int_to_ptr.vmem [resolvable:$false] %s684_s14 }
  0x3d   : > { %s686_s29 = scalar_lea.vmem %s685_s14, 1024  ;;  %p687_p5 = scmp.lt.s32.totalorder %s912_s11, %s685_s14 }
  0x3e   : > { %p683_p4 = pneg %p682_p13  ;;  %p688_p7 = scmp.lt.s32.totalorder %s686_s29, %s680_s25 }
  0x40   : > { %p689_p8 = por %p688_p7, %p687_p5 }
  0x42   : > { %p690_p10 = pnand %p689_p8, %p683_p4 }
  0xc1   : > { %v252_v11 = vpop.xlane.xlu0 %251 }
  0xc2   : > { %v256_v13 = vmul.f32 0.00390625, %v252_v11 }
  0xc4   : > { %v273_v16 = vrot.slane %v256_v13, %v272_v12 }
  0xc5   : > { %v255_v14 = vpop.xlane.xlu0 %254 }
  0xc6   : > { %v257_v15 = vmul.f32 0.00390625, %v255_v14 }
  0xc8   : > { %v277_v17 = vrot.slane %v257_v15, %v272_v12 }
  0xca   : > { %v279_v18 = vsel %vm278_vm1, %v277_v17, %v273_v16 }
  0xcb   : > { %589 = vmatmul.mubr.msk.f32.vlgmr.msra.gmra.mxu0 %vm280_vm2, %v279_v18 }
 0x18b   : > { %v349_v21 = vpop.f32.mrf.mxu0 }
 0x18c   : > { %v350_v22 = vadd.f32 %v566_v20, %v349_v21 }
 0x18d   : > { %v590_v23 = vpop.f32.mrf.mxu0 }
 0x18e   : > { %v353_v24 = vmax.f32 %v350_v22, 0.0 }
 0x190   : > { %594 = vmatmul.mubr.msk.f32.vlgmr.msra.gmra.mxu1 %vm362_vm4, %v353_v24 }
 0x250   : > { %v436_v26 = vpop.f32.mrf.mxu1 }
 0x251   : > { %v437_v27 = vadd.f32 %v568_v25, %v436_v26 }
 0x252   : > { %v595_v28 = vpop.f32.mrf.mxu1 }
 0x253   : > { %v571_v29 = vmul.f32 -1.442695, %v437_v27 }
 0x255   : > { %648 = vpow2.f32 %v571_v29 }
 0x262   : > { %v649_v30 = vpop.eup %648 }
 0x263   : > { %v443_v31 = vadd.f32 1.0, %v649_v30 }
 0x265   : > { %650 = vrcp.f32 %v443_v31 }
 0x272   : > { %v651_v33 = vpop.eup %650 }
 0x273   : > { %v449_v34 = vrot.slane %v651_v33, %v448_v32  ;;  %v456_v36 = vrot.slane %v651_v33, %v455_v35 }
 0x275   : > { %451 = vbcast.lane.b32.xlu1 %v449_v34, 256 }
 0x279   : > { %458 = vbcast.lane.b32.xlu1 %v456_v36, 256 }
 0x2e7   : > { %v452_v37 = vpop.permute.xlu1 %451 }
 0x2e8   : > { %v460_v38 = vmul.f32 %v452_v37, %v246_v0  ;;  %v461_v39 = vmul.f32 %v452_v37, %v247_v1 }
 0x2ea   : > { %464 = vst [vmem:[%s243_s10] sm:$0xff] %v460_v38  ;;  %465 = vst [vmem:[%s243_s10 + $0x8] sm:$0xff] %v461_v39 }
 0x2eb   : > { %v459_v40 = vpop.permute.xlu1 %458 }
 0x2ec   : > { %v462_v41 = vmul.f32 %v459_v40, %v891_v2  ;;  %v463_v42 = vmul.f32 %v459_v40, %v893_v4 }
 0x2ee   : > { %466 = vst [vmem:[%s243_s10 + $0x10] sm:$0xff] %v462_v41  ;;  %467 = vst [vmem:[%s243_s10 + $0x18] sm:$0xff] %v463_v42 }
 0x2ef   : > { %693 = shalt.err (!%p690_p10)
}
 0x2f0   : > { %s694_s15 = scalar_lea.hbm %s917_s28, 512  ;;  %s698_s7 = scalar_lea.hbm %s967_s5, 1024 }
 0x2f1   : > { %p695_p0 = scmp.ne.s32.totalorder %s917_s28, %s694_s15  ;;  %p699_p1 = scmp.lt.s32.totalorder %s917_s28, %s967_s5 }
 0x2f2   : > { %p700_p3 = scmp.lt.s32.totalorder %s698_s7, %s694_s15 }
 0x2f3   : > { %p696_p2 = pnand %p695_p0, %p976_p12 }
 0x2f4   : > { %p701_p6 = por %p700_p3, %p699_p1 }
 0x2f5   : > { %p697_p9 = pneg %p696_p2 }
 0x2f7   : > { %p702_p11 = pnand %p701_p6, %p697_p9 }
 0x2f9   : > { %705 = shalt.err (!%p702_p11)
}
 0x2fa   : > { %s752_s13 = smov 256   ;;  %s753_s17 = smov 16  }
 0x2fb   : > { %598 = dma.vmem_to_hbm [thread:$0]  (%p976_p12), %s912_s11, 512, %s917_s28, %s469_s22, %s752_s13, %s752_s13, %s753_s17  }
 0x2fc PF: > { %s498_s26 = sand.u32 1, %s732_s18   ;;  %p977_p13 = scmp.ne.s32.totalorder %s973_s6, 0 }
 0x2fd   : > { %p978_p4 = scmp.ge.s32.totalorder %s744_s21, 2  ;;  %s499_s25 = scalar_lea.sflag [#allocation4], %s498_s26 }
 0x2ff   : > { %p605_p5 = pnand %p978_p4, %p977_p13 }
 0x301   : > { %p606_p7 = pneg %p605_p5 }
 0x303   : > { %727 = dma.done.wait (%p606_p7), %s499_s25, 512  }
 0x304   : > { %729 = vsyncadd (%p606_p7), %s499_s25, 4294966784  ;;  %p18_p8 = scmp.ge.s32.totalorder %s809_s24, 4   ;;  %s979_s18 = smov %s736_s19 }
 0x305   : > { %s980_s19 = smov %s740_s20  ;;  %s981_s20 = smov %s821_s27 }
 0x306   : > { %s982_s21 = smov %s809_s24  ;;  %20 = sbr.rel (!%p18_p8) target bundleno = 5 (0x5), region = 85 }
 0x30b   :  { %504 = vsyncpa [#allocation3], 1 }
 0x30c   :  { %506 = vsyncpa [#allocation3 + $0x1], 1 }
 0x30d   :  { %507 = vsyncpa [#allocation4], 1 }
 0x30e   :  { %509 = vsyncpa [#allocation4 + $0x1], 1 }

</bundles_post_ra>
